<compile_context>
chip_gen: v5e
topology: v5e:2x2
jax: 0.10.0
libtpu: 0.0.40
codegen_flags: <defaults>
</compile_context>

<pallas_src>
import functools

import jax
import jax.numpy as jnp
from jax.experimental import pallas as pl
from jax.experimental.pallas import tpu as pltpu


def _tconv_relu_kernel(x_ref, w_ref, b_ref, o_ref, p_ref, *,
                       k_h, k_w, w_p, c_in_p, nb, m_pad):
    """One grid step handles `nb` batch elements.

    x_ref: (nb, C_in_p, L)       flattened (row-major, width W_p) dilated+padded input
    w_ref: (C_out, K)            K = kH*kW*C_in_p, rows ordered (kh, kw, ci)
    b_ref: (C_out, 1)            f32 bias
    o_ref: (nb, C_out, M_pad)    "wide" rows + 128-pad, cropped in the wrapper
    p_ref: (K, nb*M_pad)         VMEM scratch: im2col matrix (compute dtype)
    """
    slab_w = m_pad + k_w - 1
    # --- im2col: one slab load per (batch, kh); kw taps are lane shifts. ---
    for n in range(nb):
        for kh in range(k_h):
            slab = x_ref[n, :, kh * w_p: kh * w_p + slab_w]   # (C_in_p, slab_w)
            for kw in range(k_w):
                t = kh * k_w + kw
                # 8-sublane-aligned, 128-lane-aligned full-tile store.
                p_ref[t * c_in_p:(t + 1) * c_in_p,
                      n * m_pad:(n + 1) * m_pad] = slab[:, kw:kw + m_pad]

    # --- single K contraction on the MXU, f32 accumulation. ---
    acc = jnp.dot(w_ref[...], p_ref[...], preferred_element_type=jnp.float32)
    acc = acc + b_ref[...]                # (C_out, 1) broadcast over lanes
    acc = jnp.maximum(acc, 0.5 * acc)     # LeakyReLU(negative_slope=0.5)

    for n in range(nb):
        o_ref[n] = acc[:, n * m_pad:(n + 1) * m_pad].astype(o_ref.dtype)


def _is_multi_tensorcore_chip():
    # v7x has 2 TensorCores per chip: keep the per-batch grid axis there.
    # Single-TC chips (v5e / v6e): fold the batch into one grid step instead.
    try:
        kind = jax.devices()[0].device_kind.lower()
    except Exception:
        return False
    return "v7" in kind


@functools.partial(
    jax.jit,
    static_argnames=("stride", "padding", "output_padding", "fold_batch",
                     "compute_dtype"))
def basic_tconv2d(x, weight, bias, *, stride, padding, output_padding=0,
                  fold_batch=None, compute_dtype=None):
    """ConvTranspose2d(stride, padding) + LeakyReLU(0.5).

    x:      (N, C_in, H, W)        NCHW, like PyTorch
    weight: (C_in, C_out, kH, kW)  PyTorch ConvTranspose2d layout
    bias:   (C_out,)
    returns (N, C_out, H_out, W_out)
    """
    n, c_in, h_in, w_in = x.shape
    wc_in, c_out, k_h, k_w = weight.shape
    assert wc_in == c_in, (wc_in, c_in)
    assert output_padding == 0, "output_padding != 0 is not supported"

    h_out = (h_in - 1) * stride - 2 * padding + k_h
    w_out = (w_in - 1) * stride - 2 * padding + k_w

    # Transposed conv == plain conv on a zero-inserted input padded by k-1-p.
    pad_h = k_h - 1 - padding
    pad_w = k_w - 1 - padding
    assert pad_h >= 0 and pad_w >= 0, "padding > kernel_size - 1 not supported"
    h_d = (h_in - 1) * stride + 1
    w_d = (w_in - 1) * stride + 1
    h_p = h_d + 2 * pad_h
    w_p = w_d + 2 * pad_w

    if compute_dtype is None:
        compute_dtype = x.dtype   # pass jnp.bfloat16 for bf16-native MXU feeds

    # Pad C_in to a multiple of 8 -> every im2col tap store is a full,
    # unmasked 8-sublane group.  Extra channels are zero (matching zero W rows).
    c_in_p = max(8, ((c_in + 7) // 8) * 8)

    # Flattened "wide row" output length, padded to a multiple of 128 lanes so
    # stores and MXU tiles are lane-dense; cropped back in the wrapper.
    m_wide = h_out * w_p
    m_pad = ((m_wide + 127) // 128) * 128

    # The flat input buffer must cover the widest slab the kernel reads:
    # offset (kH-1)*W_p plus (M_pad + kW - 1) lanes.
    req_len = (k_h - 1) * w_p + m_pad + (k_w - 1)
    h_rows = max(h_p, -(-req_len // w_p))
    l_flat = h_rows * w_p
    assert (k_h - 1) * w_p + m_pad + (k_w - 1) <= l_flat

    # Fused zero-insertion + edge padding + channel padding: one scatter into a
    # zeros buffer (single HBM pass, no separate jnp.pad).
    x_buf = jnp.zeros((n, c_in_p, h_rows, w_p), dtype=compute_dtype)
    x_buf = x_buf.at[:, :c_in, pad_h:pad_h + h_d:stride,
                     pad_w:pad_w + w_d:stride].set(x.astype(compute_dtype))
    x_flat = x_buf.reshape(n, c_in_p, l_flat)

    # Equivalent-conv weight flattened to (C_out, K), K ordered (kh, kw, ci_p).
    k_total = k_h * k_w * c_in_p
    w_pad = jnp.zeros((c_in_p, c_out, k_h, k_w), dtype=compute_dtype)
    w_pad = w_pad.at[:c_in].set(weight.astype(compute_dtype))
    w_eff = jnp.transpose(jnp.flip(w_pad, axis=(2, 3)), (2, 3, 0, 1))  # kH,kW,Cip,Co
    w2 = jnp.transpose(w_eff.reshape(k_total, c_out), (1, 0))          # Co, K
    b2 = bias.astype(jnp.float32).reshape(c_out, 1)

    # Batch folding: one grid step for the whole batch on single-TC chips (the
    # per-step fixed cost dominates at these sizes and the MXU RHS gets wider);
    # keep grid=(N,) on multi-TC chips so both TensorCores get work.
    if fold_batch is None:
        fold_batch = not _is_multi_tensorcore_chip()
    itemsize = jnp.dtype(compute_dtype).itemsize
    scratch_bytes = k_total * n * m_pad * itemsize
    nb = n if (fold_batch and scratch_bytes <= (8 << 20)) else 1
    grid = (n // nb,)

    kernel = functools.partial(_tconv_relu_kernel, k_h=k_h, k_w=k_w, w_p=w_p,
                               c_in_p=c_in_p, nb=nb, m_pad=m_pad)

    out_wide = pl.pallas_call(
        kernel,
        out_shape=jax.ShapeDtypeStruct((n, c_out, m_pad), x.dtype),
        grid_spec=pltpu.PrefetchScalarGridSpec(
            num_scalar_prefetch=0,
            grid=grid,
            in_specs=[
                pl.BlockSpec((nb, c_in_p, l_flat), lambda b: (b, 0, 0)),
                pl.BlockSpec((c_out, k_total), lambda b: (0, 0)),
                pl.BlockSpec((c_out, 1), lambda b: (0, 0)),
            ],
            out_specs=pl.BlockSpec((nb, c_out, m_pad), lambda b: (b, 0, 0)),
            scratch_shapes=[pltpu.VMEM((k_total, nb * m_pad), compute_dtype)],
        ),
        compiler_params=pltpu.CompilerParams(
            dimension_semantics=("parallel",)),
    )(x_flat, w2, b2)

    # Drop the 128-pad and wrap-around columns; output is already NCHW.
    out = out_wide[:, :, :m_wide].reshape(n, c_out, h_out, w_p)
    return out[:, :, :, :w_out]


def _reference(x, weight, bias, *, stride, padding):
    """Pure-JAX reference (dilated conv with flipped kernel) for verification."""
    k_h, k_w = weight.shape[2], weight.shape[3]
    pad_h = k_h - 1 - padding
    pad_w = k_w - 1 - padding
    w_flip = jnp.transpose(jnp.flip(weight, axis=(2, 3)), (1, 0, 2, 3))  # OIHW
    y = jax.lax.conv_general_dilated(
        x, w_flip,
        window_strides=(1, 1),
        padding=[(pad_h, pad_h), (pad_w, pad_w)],
        lhs_dilation=(stride, stride),
        dimension_numbers=("NCHW", "OIHW", "NCHW"))
    y = y + bias[None, :, None, None]
    return jnp.where(y >= 0, y, 0.5 * y)


if __name__ == "__main__":
    # Module config (small, consistent with BasicTConv2d):
    in_channels, out_channels = 4, 8
    kernel_size, stride, padding = 3, 2, 1

    key = jax.random.PRNGKey(0)
    kx, kw, kb = jax.random.split(key, 3)

    # input: NCHW, batch=2, channels=4, spatial=16
    x = jax.random.normal(kx, (2, in_channels, 16, 16), dtype=jnp.float32)
    # deterministic parameters (ConvTranspose2d weight layout: Ci, Co, kH, kW)
    weight = 0.1 * jax.random.normal(
        kw, (in_channels, out_channels, kernel_size, kernel_size),
        dtype=jnp.float32)
    bias = 0.1 * jax.random.normal(kb, (out_channels,), dtype=jnp.float32)

    out = basic_tconv2d(x, weight, bias, stride=stride, padding=padding)
    out = jax.block_until_ready(out)

    ref = _reference(x, weight, bias, stride=stride, padding=padding)
    assert out.shape == ref.shape == (2, out_channels, 31, 31), out.shape
    assert jnp.allclose(out, ref, atol=1e-3, rtol=1e-3), float(
        jnp.max(jnp.abs(out - ref)))

    # Also exercise the non-folded (per-batch grid) path used on multi-TC chips.
    out2 = basic_tconv2d(x, weight, bias, stride=stride, padding=padding,
                         fold_batch=False)
    out2 = jax.block_until_ready(out2)
    assert jnp.allclose(out2, ref, atol=1e-3, rtol=1e-3), float(
        jnp.max(jnp.abs(out2 - ref)))

    print("KERNEL_OK")
</pallas_src>

<mosaic_0001>
module attributes {stable_mosaic.version = 11 : i64} {
  func.func @_tconv_relu_kernel(%arg0: i32, %arg1: memref<2x8x1122xf32, #tpu.memory_space<vmem>>, %arg2: memref<8x72xf32, #tpu.memory_space<vmem>>, %arg3: memref<8x1xf32, #tpu.memory_space<vmem>>, %arg4: memref<2x8x1024xf32, #tpu.memory_space<vmem>>, %arg5: memref<72x2048xf32, #tpu.memory_space<vmem>>) attributes {dimension_semantics = [#tpu.dimension_semantics<parallel>], iteration_bounds = array<i64: 1>, scalar_prefetch = 0 : i64, scratch_operands = 1 : i64, tpu.core_type = #tpu.core_type<tc>, window_params = [{transform_indices = @transform_0, window_bounds = array<i64: 2, 8, 1122>}, {pipeline_mode = #tpu.pipeline_mode<synchronous>, transform_indices = @transform_1, window_bounds = array<i64: 8, 72>}, {pipeline_mode = #tpu.pipeline_mode<synchronous>, transform_indices = @transform_2, window_bounds = array<i64: 8, 1>}, {transform_indices = @transform_3, window_bounds = array<i64: 2, 8, 1024>}]} {
    %c0 = arith.constant 0 : index
    %c0_0 = arith.constant 0 : index
    %c0_1 = arith.constant 0 : index
    %0 = vector.load %arg1[%c0, %c0_0, %c0_1] : memref<2x8x1122xf32, #tpu.memory_space<vmem>>, vector<1x8x1026xf32>
    %1 = vector.shape_cast %0 : vector<1x8x1026xf32> to vector<8x1026xf32>
    %2 = vector.extract_strided_slice %1 {offsets = [0, 0], sizes = [8, 1024], strides = [1, 1]} : vector<8x1026xf32> to vector<8x1024xf32>
    %c0_2 = arith.constant 0 : index
    %c0_3 = arith.constant 0 : index
    %3 = vector.load %arg5[%c0_2, %c0_3] : memref<72x2048xf32, #tpu.memory_space<vmem>>, vector<8x1024xf32>
    tpu.vector_store %arg5[%c0_2, %c0_3], %2 {strides = array<i32>} : memref<72x2048xf32, #tpu.memory_space<vmem>>, vector<8x1024xf32>,
    %4 = vector.extract_strided_slice %1 {offsets = [0, 1], sizes = [8, 1024], strides = [1, 1]} : vector<8x1026xf32> to vector<8x1024xf32>
    %c8 = arith.constant 8 : index
    %c0_4 = arith.constant 0 : index
    %5 = vector.load %arg5[%c8, %c0_4] : memref<72x2048xf32, #tpu.memory_space<vmem>>, vector<8x1024xf32>
    tpu.vector_store %arg5[%c8, %c0_4], %4 {strides = array<i32>} : memref<72x2048xf32, #tpu.memory_space<vmem>>, vector<8x1024xf32>,
    %6 = vector.extract_strided_slice %1 {offsets = [0, 2], sizes = [8, 1024], strides = [1, 1]} : vector<8x1026xf32> to vector<8x1024xf32>
    %c16 = arith.constant 16 : index
    %c0_5 = arith.constant 0 : index
    %7 = vector.load %arg5[%c16, %c0_5] : memref<72x2048xf32, #tpu.memory_space<vmem>>, vector<8x1024xf32>
    tpu.vector_store %arg5[%c16, %c0_5], %6 {strides = array<i32>} : memref<72x2048xf32, #tpu.memory_space<vmem>>, vector<8x1024xf32>,
    %c0_6 = arith.constant 0 : index
    %c0_7 = arith.constant 0 : index
    %c33 = arith.constant 33 : index
    %8 = vector.load %arg1[%c0_6, %c0_7, %c33] : memref<2x8x1122xf32, #tpu.memory_space<vmem>>, vector<1x8x1026xf32>
    %9 = vector.shape_cast %8 : vector<1x8x1026xf32> to vector<8x1026xf32>
    %10 = vector.extract_strided_slice %9 {offsets = [0, 0], sizes = [8, 1024], strides = [1, 1]} : vector<8x1026xf32> to vector<8x1024xf32>
    %c24 = arith.constant 24 : index
    %c0_8 = arith.constant 0 : index
    %11 = vector.load %arg5[%c24, %c0_8] : memref<72x2048xf32, #tpu.memory_space<vmem>>, vector<8x1024xf32>
    tpu.vector_store %arg5[%c24, %c0_8], %10 {strides = array<i32>} : memref<72x2048xf32, #tpu.memory_space<vmem>>, vector<8x1024xf32>,
    %12 = vector.extract_strided_slice %9 {offsets = [0, 1], sizes = [8, 1024], strides = [1, 1]} : vector<8x1026xf32> to vector<8x1024xf32>
    %c32 = arith.constant 32 : index
    %c0_9 = arith.constant 0 : index
    %13 = vector.load %arg5[%c32, %c0_9] : memref<72x2048xf32, #tpu.memory_space<vmem>>, vector<8x1024xf32>
    tpu.vector_store %arg5[%c32, %c0_9], %12 {strides = array<i32>} : memref<72x2048xf32, #tpu.memory_space<vmem>>, vector<8x1024xf32>,
    %14 = vector.extract_strided_slice %9 {offsets = [0, 2], sizes = [8, 1024], strides = [1, 1]} : vector<8x1026xf32> to vector<8x1024xf32>
    %c40 = arith.constant 40 : index
    %c0_10 = arith.constant 0 : index
    %15 = vector.load %arg5[%c40, %c0_10] : memref<72x2048xf32, #tpu.memory_space<vmem>>, vector<8x1024xf32>
    tpu.vector_store %arg5[%c40, %c0_10], %14 {strides = array<i32>} : memref<72x2048xf32, #tpu.memory_space<vmem>>, vector<8x1024xf32>,
    %c0_11 = arith.constant 0 : index
    %c0_12 = arith.constant 0 : index
    %c66 = arith.constant 66 : index
    %16 = vector.load %arg1[%c0_11, %c0_12, %c66] : memref<2x8x1122xf32, #tpu.memory_space<vmem>>, vector<1x8x1026xf32>
    %17 = vector.shape_cast %16 : vector<1x8x1026xf32> to vector<8x1026xf32>
    %18 = vector.extract_strided_slice %17 {offsets = [0, 0], sizes = [8, 1024], strides = [1, 1]} : vector<8x1026xf32> to vector<8x1024xf32>
    %c48 = arith.constant 48 : index
    %c0_13 = arith.constant 0 : index
    %19 = vector.load %arg5[%c48, %c0_13] : memref<72x2048xf32, #tpu.memory_space<vmem>>, vector<8x1024xf32>
    tpu.vector_store %arg5[%c48, %c0_13], %18 {strides = array<i32>} : memref<72x2048xf32, #tpu.memory_space<vmem>>, vector<8x1024xf32>,
    %20 = vector.extract_strided_slice %17 {offsets = [0, 1], sizes = [8, 1024], strides = [1, 1]} : vector<8x1026xf32> to vector<8x1024xf32>
    %c56 = arith.constant 56 : index
    %c0_14 = arith.constant 0 : index
    %21 = vector.load %arg5[%c56, %c0_14] : memref<72x2048xf32, #tpu.memory_space<vmem>>, vector<8x1024xf32>
    tpu.vector_store %arg5[%c56, %c0_14], %20 {strides = array<i32>} : memref<72x2048xf32, #tpu.memory_space<vmem>>, vector<8x1024xf32>,
    %22 = vector.extract_strided_slice %17 {offsets = [0, 2], sizes = [8, 1024], strides = [1, 1]} : vector<8x1026xf32> to vector<8x1024xf32>
    %c64 = arith.constant 64 : index
    %c0_15 = arith.constant 0 : index
    %23 = vector.load %arg5[%c64, %c0_15] : memref<72x2048xf32, #tpu.memory_space<vmem>>, vector<8x1024xf32>
    tpu.vector_store %arg5[%c64, %c0_15], %22 {strides = array<i32>} : memref<72x2048xf32, #tpu.memory_space<vmem>>, vector<8x1024xf32>,
    %c1 = arith.constant 1 : index
    %c0_16 = arith.constant 0 : index
    %c0_17 = arith.constant 0 : index
    %24 = vector.load %arg1[%c1, %c0_16, %c0_17] : memref<2x8x1122xf32, #tpu.memory_space<vmem>>, vector<1x8x1026xf32>
    %25 = vector.shape_cast %24 : vector<1x8x1026xf32> to vector<8x1026xf32>
    %26 = vector.extract_strided_slice %25 {offsets = [0, 0], sizes = [8, 1024], strides = [1, 1]} : vector<8x1026xf32> to vector<8x1024xf32>
    %c0_18 = arith.constant 0 : index
    %c1024 = arith.constant 1024 : index
    %27 = vector.load %arg5[%c0_18, %c1024] : memref<72x2048xf32, #tpu.memory_space<vmem>>, vector<8x1024xf32>
    tpu.vector_store %arg5[%c0_18, %c1024], %26 {strides = array<i32>} : memref<72x2048xf32, #tpu.memory_space<vmem>>, vector<8x1024xf32>,
    %28 = vector.extract_strided_slice %25 {offsets = [0, 1], sizes = [8, 1024], strides = [1, 1]} : vector<8x1026xf32> to vector<8x1024xf32>
    %c8_19 = arith.constant 8 : index
    %c1024_20 = arith.constant 1024 : index
    %29 = vector.load %arg5[%c8_19, %c1024_20] : memref<72x2048xf32, #tpu.memory_space<vmem>>, vector<8x1024xf32>
    tpu.vector_store %arg5[%c8_19, %c1024_20], %28 {strides = array<i32>} : memref<72x2048xf32, #tpu.memory_space<vmem>>, vector<8x1024xf32>,
    %30 = vector.extract_strided_slice %25 {offsets = [0, 2], sizes = [8, 1024], strides = [1, 1]} : vector<8x1026xf32> to vector<8x1024xf32>
    %c16_21 = arith.constant 16 : index
    %c1024_22 = arith.constant 1024 : index
    %31 = vector.load %arg5[%c16_21, %c1024_22] : memref<72x2048xf32, #tpu.memory_space<vmem>>, vector<8x1024xf32>
    tpu.vector_store %arg5[%c16_21, %c1024_22], %30 {strides = array<i32>} : memref<72x2048xf32, #tpu.memory_space<vmem>>, vector<8x1024xf32>,
    %c1_23 = arith.constant 1 : index
    %c0_24 = arith.constant 0 : index
    %c33_25 = arith.constant 33 : index
    %32 = vector.load %arg1[%c1_23, %c0_24, %c33_25] : memref<2x8x1122xf32, #tpu.memory_space<vmem>>, vector<1x8x1026xf32>
    %33 = vector.shape_cast %32 : vector<1x8x1026xf32> to vector<8x1026xf32>
    %34 = vector.extract_strided_slice %33 {offsets = [0, 0], sizes = [8, 1024], strides = [1, 1]} : vector<8x1026xf32> to vector<8x1024xf32>
    %c24_26 = arith.constant 24 : index
    %c1024_27 = arith.constant 1024 : index
    %35 = vector.load %arg5[%c24_26, %c1024_27] : memref<72x2048xf32, #tpu.memory_space<vmem>>, vector<8x1024xf32>
    tpu.vector_store %arg5[%c24_26, %c1024_27], %34 {strides = array<i32>} : memref<72x2048xf32, #tpu.memory_space<vmem>>, vector<8x1024xf32>,
    %36 = vector.extract_strided_slice %33 {offsets = [0, 1], sizes = [8, 1024], strides = [1, 1]} : vector<8x1026xf32> to vector<8x1024xf32>
    %c32_28 = arith.constant 32 : index
    %c1024_29 = arith.constant 1024 : index
    %37 = vector.load %arg5[%c32_28, %c1024_29] : memref<72x2048xf32, #tpu.memory_space<vmem>>, vector<8x1024xf32>
    tpu.vector_store %arg5[%c32_28, %c1024_29], %36 {strides = array<i32>} : memref<72x2048xf32, #tpu.memory_space<vmem>>, vector<8x1024xf32>,
    %38 = vector.extract_strided_slice %33 {offsets = [0, 2], sizes = [8, 1024], strides = [1, 1]} : vector<8x1026xf32> to vector<8x1024xf32>
    %c40_30 = arith.constant 40 : index
    %c1024_31 = arith.constant 1024 : index
    %39 = vector.load %arg5[%c40_30, %c1024_31] : memref<72x2048xf32, #tpu.memory_space<vmem>>, vector<8x1024xf32>
    tpu.vector_store %arg5[%c40_30, %c1024_31], %38 {strides = array<i32>} : memref<72x2048xf32, #tpu.memory_space<vmem>>, vector<8x1024xf32>,
    %c1_32 = arith.constant 1 : index
    %c0_33 = arith.constant 0 : index
    %c66_34 = arith.constant 66 : index
    %40 = vector.load %arg1[%c1_32, %c0_33, %c66_34] : memref<2x8x1122xf32, #tpu.memory_space<vmem>>, vector<1x8x1026xf32>
    %41 = vector.shape_cast %40 : vector<1x8x1026xf32> to vector<8x1026xf32>
    %42 = vector.extract_strided_slice %41 {offsets = [0, 0], sizes = [8, 1024], strides = [1, 1]} : vector<8x1026xf32> to vector<8x1024xf32>
    %c48_35 = arith.constant 48 : index
    %c1024_36 = arith.constant 1024 : index
    %43 = vector.load %arg5[%c48_35, %c1024_36] : memref<72x2048xf32, #tpu.memory_space<vmem>>, vector<8x1024xf32>
    tpu.vector_store %arg5[%c48_35, %c1024_36], %42 {strides = array<i32>} : memref<72x2048xf32, #tpu.memory_space<vmem>>, vector<8x1024xf32>,
    %44 = vector.extract_strided_slice %41 {offsets = [0, 1], sizes = [8, 1024], strides = [1, 1]} : vector<8x1026xf32> to vector<8x1024xf32>
    %c56_37 = arith.constant 56 : index
    %c1024_38 = arith.constant 1024 : index
    %45 = vector.load %arg5[%c56_37, %c1024_38] : memref<72x2048xf32, #tpu.memory_space<vmem>>, vector<8x1024xf32>
    tpu.vector_store %arg5[%c56_37, %c1024_38], %44 {strides = array<i32>} : memref<72x2048xf32, #tpu.memory_space<vmem>>, vector<8x1024xf32>,
    %46 = vector.extract_strided_slice %41 {offsets = [0, 2], sizes = [8, 1024], strides = [1, 1]} : vector<8x1026xf32> to vector<8x1024xf32>
    %c64_39 = arith.constant 64 : index
    %c1024_40 = arith.constant 1024 : index
    %47 = vector.load %arg5[%c64_39, %c1024_40] : memref<72x2048xf32, #tpu.memory_space<vmem>>, vector<8x1024xf32>
    tpu.vector_store %arg5[%c64_39, %c1024_40], %46 {strides = array<i32>} : memref<72x2048xf32, #tpu.memory_space<vmem>>, vector<8x1024xf32>,
    %c0_41 = arith.constant 0 : index
    %c0_42 = arith.constant 0 : index
    %48 = vector.load %arg2[%c0_41, %c0_42] : memref<8x72xf32, #tpu.memory_space<vmem>>, vector<8x72xf32>
    %c0_43 = arith.constant 0 : index
    %c0_44 = arith.constant 0 : index
    %49 = vector.load %arg5[%c0_43, %c0_44] : memref<72x2048xf32, #tpu.memory_space<vmem>>, vector<72x2048xf32>
    %cst = arith.constant dense<0.000000e+00> : vector<8x2048xf32>
    %50 = tpu.matmul %48, %49, %cst {dimension_numbers = #tpu.dot_dimension_numbers<[1], [0], [0], [1], [0, 0, 1, 1], [], []>} : vector<8x72xf32>, vector<72x2048xf32>, vector<8x2048xf32> -> vector<8x2048xf32>
    %c0_45 = arith.constant 0 : index
    %c0_46 = arith.constant 0 : index
    %51 = vector.load %arg3[%c0_45, %c0_46] : memref<8x1xf32, #tpu.memory_space<vmem>>, vector<8x1xf32>
    %52 = vector.broadcast %51 : vector<8x1xf32> to vector<8x2048xf32>
    %53 = arith.addf %50, %52 : vector<8x2048xf32>
    %cst_47 = arith.constant 5.000000e-01 : f32
    %54 = vector.broadcast %cst_47 : f32 to vector<8x2048xf32>
    %55 = arith.mulf %54, %53 : vector<8x2048xf32>
    %56 = arith.maximumf %53, %55 : vector<8x2048xf32>
    %57 = vector.extract_strided_slice %56 {offsets = [0, 0], sizes = [8, 1024], strides = [1, 1]} : vector<8x2048xf32> to vector<8x1024xf32>
    %c0_48 = arith.constant 0 : index
    %c0_49 = arith.constant 0 : index
    %c0_50 = arith.constant 0 : index
    %58 = vector.load %arg4[%c0_48, %c0_49, %c0_50] : memref<2x8x1024xf32, #tpu.memory_space<vmem>>, vector<1x8x1024xf32>
    %59 = vector.shape_cast %58 : vector<1x8x1024xf32> to vector<8x1024xf32>
    %60 = vector.shape_cast %57 : vector<8x1024xf32> to vector<1x8x1024xf32>
    tpu.vector_store %arg4[%c0_48, %c0_49, %c0_50], %60 {strides = array<i32>} : memref<2x8x1024xf32, #tpu.memory_space<vmem>>, vector<1x8x1024xf32>,
    %61 = vector.extract_strided_slice %56 {offsets = [0, 1024], sizes = [8, 1024], strides = [1, 1]} : vector<8x2048xf32> to vector<8x1024xf32>
    %c1_51 = arith.constant 1 : index
    %c0_52 = arith.constant 0 : index
    %c0_53 = arith.constant 0 : index
    %62 = vector.load %arg4[%c1_51, %c0_52, %c0_53] : memref<2x8x1024xf32, #tpu.memory_space<vmem>>, vector<1x8x1024xf32>
    %63 = vector.shape_cast %62 : vector<1x8x1024xf32> to vector<8x1024xf32>
    %64 = vector.shape_cast %61 : vector<8x1024xf32> to vector<1x8x1024xf32>
    tpu.vector_store %arg4[%c1_51, %c0_52, %c0_53], %64 {strides = array<i32>} : memref<2x8x1024xf32, #tpu.memory_space<vmem>>, vector<1x8x1024xf32>,
    return
  }
  func.func @transform_0(%arg0: i32) -> (i32, i32, i32) {
    %c0_i32 = arith.constant 0 : i32
    %c0_i32_0 = arith.constant 0 : i32
    %c0_i32_1 = arith.constant 0 : i32
    return %arg0, %c0_i32, %c0_i32_0 : i32, i32, i32
  }
  func.func @transform_1(%arg0: i32) -> (i32, i32) {
    %c0_i32 = arith.constant 0 : i32
    %c0_i32_0 = arith.constant 0 : i32
    %c0_i32_1 = arith.constant 0 : i32
    return %c0_i32, %c0_i32_0 : i32, i32
  }
  func.func @transform_2(%arg0: i32) -> (i32, i32) {
    %c0_i32 = arith.constant 0 : i32
    %c0_i32_0 = arith.constant 0 : i32
    %c0_i32_1 = arith.constant 0 : i32
    return %c0_i32, %c0_i32_0 : i32, i32
  }
  func.func @transform_3(%arg0: i32) -> (i32, i32, i32) {
    %c0_i32 = arith.constant 0 : i32
    %c0_i32_0 = arith.constant 0 : i32
    %c0_i32_1 = arith.constant 0 : i32
    return %arg0, %c0_i32, %c0_i32_0 : i32, i32, i32
  }
}

</mosaic_0001>

<bundles_post_ra>
// kernel: basic_tconv2d.1
= control target key start
LH: loop header
LB: loop body
LE: loop exit
PB: predicated region body
PF: predicated region fallthrough
CT: control target
= control target key end

     0   :  { %s1758_s24 = smov 127   ;;  %s1759_s6 = smov 126   ;;  %vm58_vm0 = vcmask 1039360   ;;  %vm101_vm1 = vcmask 1031168   ;;  %vm162_vm2 = vcmask 777216   ;;  %vm205_vm3 = vcmask 769024   ;;  %s2769_s0 = inlined_call_operand.vmem [shape: f32[2,8,1122], index: 0, kind: input, shape index: {}]   ;;  %s2770_s1 = inlined_call_operand.vmem [shape: f32[8,72], index: 1, kind: input, shape index: {}]   ;;  %s2771_s2 = inlined_call_operand.vmem [shape: f32[8,1], index: 2, kind: input, shape index: {}]   ;;  %s2772_s3 = inlined_call_operand.vmem [shape: f32[2,8,1024], index: 3, kind: output, shape index: {}]  }
   0x1   :  { %v22_v0 = vld [vmem:[%s2769_s0 + $0x40] sm:$0xff]  ;;  %v1793_v1 = vld [vmem:[%s2769_s0 + $0x48] sm:$0xff]  ;;  %v1826_v9 = vld [vmem:[%s2769_s0 + $0x30] sm:$0xff]  ;;  %s1760_s9 = smov 95   ;;  %s1761_s10 = smov 94   ;;  %vm395_vm4 = vcmask 490496  }
   0x2   :  { %v1427_v2 = vpack.i.bf16 %v1793_v1, %v22_v0  ;;  %v1799_v3 = vld [vmem:[%s2769_s0 + $0x20] sm:$0xff]  ;;  %v1804_v4 = vld [vmem:[%s2769_s0 + $0x28] sm:$0xff]  ;;  %2821 = vst [vmem:[#allocation4_spill] sm:$0xff] %v1826_v9  ;;  %v1831_v10 = vld [vmem:[%s2769_s0 + $0x38] sm:$0xff]  ;;  %s1762_s11 = smov 93   ;;  %s1763_s12 = smov 62  }
   0x3   :  { %2820 = vst [vmem:[#allocation3_spill] sm:$0xff] %v1804_v4  ;;  %v1809_v5 = vld [vmem:[%s2769_s0] sm:$0xff]  ;;  %v1417_v6 = vpack.i.bf16 %v1804_v4, %v1799_v3  ;;  %v1816_v7 = vld [vmem:[%s2769_s0 + $0x8] sm:$0xff]  ;;  %v1836_v11 = vld [vmem:[%s2769_s0 + $0x10] sm:$0xff]  ;;  %v1422_v13 = vpack.i.bf16 %v1831_v10, %v1826_v9  ;;  %s1764_s13 = smov 61   ;;  %s1765_s14 = smov 60  }
   0x4   :  { %1428 = vrot.lane.b32.xlu2 %v1427_v2, %s1758_s24  ;;  %v1407_v8 = vpack.i.bf16 %v1816_v7, %v1809_v5  ;;  %2822 = vst [vmem:[#allocation5_spill] sm:$0xff] %v1831_v10  ;;  %v1841_v12 = vld [vmem:[%s2769_s0 + $0x18] sm:$0xff]  ;;  %v1893_v18 = vld [vmem:[%s2769_s0 + $0x60] sm:$0xff]  ;;  %v1351_v19 = vld [vmem:[%s2769_s0 + $0x68] sm:$0xff]  ;;  %vm352_vm5 = vcmask 498688   ;;  %vm309_vm6 = vcmask 506880  }
   0x5   :  { %1418 = vrot.lane.b32.xlu1 %v1417_v6, %s1758_s24  ;;  %v1412_v14 = vpack.i.bf16 %v1841_v12, %v1836_v11  ;;  %v1856_v15 = vld [vmem:[%s2769_s0 + $0x58] sm:$0xff]  ;;  %2824 = vst [vmem:[#allocation7_spill] sm:$0xff] %v1893_v18  ;;  %v1904_v21 = vld [vmem:[%s2769_s0 + $0x50] sm:$0xff]  ;;  %v1907_v22 = vpack.i.bf16 %v1351_v19, %v1893_v18  ;;  %v1948_v32 = vld [vmem:[%s2769_s0 + $0x80] sm:$0xff]  ;;  %vm248_vm7 = vcmask 760832   ;;  %vm970_vm8 = vcmask 588800  }
   0x6   :  { %1408 = vrot.lane.b32.xlu0 %v1407_v8, %s1758_s24  ;;  %2823 = vst [vmem:[#allocation6_spill] sm:$0xff] %v1856_v15  ;;  %v1452_v16 = vpack.i.bf16 %v1856_v15, %v22_v0  ;;  %v1607_v23 = vpack.i.bf16 %v1856_v15, %v1904_v21  ;;  %v1920_v25 = vld [vmem:[%s2769_s0 + $0x70] sm:$0xff]  ;;  %v1353_v26 = vld [vmem:[%s2769_s0 + $0x78] sm:$0xff]  ;;  %v1939_v31 = vpack.i.bf16 %v1904_v21, %v1793_v1  ;;  %v2009_v52 = vld [vmem:[%s2769_s0 + $0x88] sm:$0xff] }
   0x7   :  { %2825 = vst [vmem:[#allocation8_spill] sm:$0xff] %v1904_v21  ;;  %v1617_v27 = vpack.i.bf16 %v1353_v26, %v1920_v25  ;;  %v1963_v40 = vpack.i.bf16 %v1948_v32, %v1353_v26  ;;  %v1662_v59 = vpack.i.bf16 %v1920_v25, %v2009_v52 }
   0xc   :  { %1433 = vrot.lane.b32.xlu2 %v1407_v8, %s1759_s6 }
   0xd   :  { %1423 = vrot.lane.b32.xlu1 %v1422_v13, %s1758_s24 }
   0xe   :  { %1413 = vrot.lane.b32.xlu0 %v1412_v14, %s1758_s24 }
  0x14   :  { %1448 = vrot.lane.b32.xlu2 %v1422_v13, %s1759_s6 }
  0x15   :  { %1443 = vrot.lane.b32.xlu1 %v1417_v6, %s1759_s6 }
  0x16   :  { %1438 = vrot.lane.b32.xlu0 %v1412_v14, %s1759_s6 }
  0x1c   :  { %1463 = vrot.lane.b32.xlu2 %v1412_v14, %s1760_s9 }
  0x1d   :  { %1458 = vrot.lane.b32.xlu1 %v1407_v8, %s1760_s9 }
  0x1e   :  { %1453 = vrot.lane.b32.xlu0 %v1452_v16, %s1759_s6 }
  0x24   :  { %1478 = vrot.lane.b32.xlu2 %v1452_v16, %s1760_s9 }
  0x25   :  { %1473 = vrot.lane.b32.xlu1 %v1422_v13, %s1760_s9 }
  0x26   :  { %1468 = vrot.lane.b32.xlu0 %v1417_v6, %s1760_s9 }
  0x2c   :  { %1493 = vrot.lane.b32.xlu2 %v1417_v6, %s1761_s10 }
  0x2d   :  { %1488 = vrot.lane.b32.xlu1 %v1412_v14, %s1761_s10 }
  0x2e   :  { %1483 = vrot.lane.b32.xlu0 %v1407_v8, %s1761_s10 }
  0x34   :  { %1508 = vrot.lane.b32.xlu2 %v1407_v8, %s1762_s11 }
  0x35   :  { %1503 = vrot.lane.b32.xlu1 %v1452_v16, %s1761_s10 }
  0x36   :  { %1498 = vrot.lane.b32.xlu0 %v1422_v13, %s1761_s10 }
  0x3c   :  { %1523 = vrot.lane.b32.xlu2 %v1422_v13, %s1762_s11 }
  0x3d   :  { %1518 = vrot.lane.b32.xlu1 %v1417_v6, %s1762_s11 }
  0x3e   :  { %1513 = vrot.lane.b32.xlu0 %v1412_v14, %s1762_s11 }
  0x44   :  { %1538 = vrot.lane.b32.xlu2 %v1412_v14, %s1763_s12 }
  0x45   :  { %1533 = vrot.lane.b32.xlu1 %v1407_v8, %s1763_s12 }
  0x46   :  { %1528 = vrot.lane.b32.xlu0 %v1452_v16, %s1762_s11 }
  0x4c   :  { %1553 = vrot.lane.b32.xlu2 %v1452_v16, %s1763_s12 }
  0x4d   :  { %1548 = vrot.lane.b32.xlu1 %v1422_v13, %s1763_s12 }
  0x4e   :  { %1543 = vrot.lane.b32.xlu0 %v1417_v6, %s1763_s12 }
  0x54   :  { %1568 = vrot.lane.b32.xlu2 %v1417_v6, %s1764_s13 }
  0x55   :  { %1563 = vrot.lane.b32.xlu1 %v1412_v14, %s1764_s13 }
  0x56   :  { %1558 = vrot.lane.b32.xlu0 %v1407_v8, %s1764_s13 }
  0x5c   :  { %1583 = vrot.lane.b32.xlu2 %v1407_v8, %s1765_s14 }
  0x5d   :  { %1578 = vrot.lane.b32.xlu1 %v1452_v16, %s1764_s13 }
  0x5e   :  { %1573 = vrot.lane.b32.xlu0 %v1422_v13, %s1764_s13  ;;  %v1886_v17 = vpop.permute.xlu2 %1428 }
  0x5f   :  { %v1430_v34 = vunpack.i.l.bf16 %v1886_v17 }
  0x64   :  { %1598 = vrot.lane.b32.xlu2 %v1422_v13, %s1765_s14 }
  0x65   :  { %1593 = vrot.lane.b32.xlu1 %v1417_v6, %s1765_s14 }
  0x66   :  { %1588 = vrot.lane.b32.xlu0 %v1412_v14, %s1765_s14  ;;  %v1899_v20 = vpop.permute.xlu2 %1433 }
  0x67   :  { %v2797_v56 = vunpack.i.h.bf16 %v1899_v20 }
  0x6c   :  { %1613 = vrot.lane.b32.xlu2 %v1907_v22, %s1758_s24 }
  0x6d   :  { %1608 = vrot.lane.b32.xlu1 %v1607_v23, %s1758_s24 }
  0x6e   :  { %1603 = vrot.lane.b32.xlu0 %v1452_v16, %s1765_s14  ;;  %v1915_v24 = vpop.permute.xlu2 %1448 }
  0x6f   :  { %v2775_v49 = vunpack.i.l.bf16 %v1915_v24  ;;  %v2776_v8 = vunpack.i.h.bf16 %v1915_v24 }
  0x74   :  { %1628 = vrot.lane.b32.xlu2 %v1907_v22, %s1764_s13 }
  0x75   :  { %1623 = vrot.lane.b32.xlu1 %v1907_v22, %s1765_s14 }
  0x76   :  { %1618 = vrot.lane.b32.xlu0 %v1617_v27, %s1758_s24  ;;  %v1931_v28 = vpop.permute.xlu2 %1463 }
  0x77   :  { %v1933_v29 = vpop.permute.xlu1 %1418  ;;  %v2787_v63 = vunpack.i.l.bf16 %v1931_v28 }
  0x78   :  { %v1935_v30 = vpop.permute.xlu0 %1408  ;;  %v2781_v36 = vunpack.i.h.bf16 %v1933_v29  ;;  %v2780_v41 = vunpack.i.l.bf16 %v1933_v29 }
  0x79   :  { %v2796_v42 = vunpack.i.h.bf16 %v1935_v30 }
  0x7c   :  { %1643 = vrot.lane.b32.xlu2 %v1939_v31, %s1765_s14 }
  0x7d   :  { %1638 = vrot.lane.b32.xlu1 %v1907_v22, %s1762_s11 }
  0x7e   :  { %1633 = vrot.lane.b32.xlu0 %v1907_v22, %s1763_s12  ;;  %v1952_v33 = vpop.permute.xlu2 %1478 }
  0x7f   :  { %2826 = vst [vmem:[#allocation9_spill] sm:$0xff] %v1952_v33  ;;  %v1955_v35 = vpop.permute.xlu1 %1423  ;;  %v1480_v19 = vunpack.i.l.bf16 %v1952_v33 }
  0x80   :  { %2827 = vst [vmem:[#allocation10_spill] sm:$0xff] %v1955_v35  ;;  %v2774_v37 = vunpack.i.h.bf16 %v1955_v35  ;;  %v2773_v38 = vunpack.i.l.bf16 %v1955_v35  ;;  %v1960_v39 = vpop.permute.xlu0 %1413 }
  0x81   :  { %v2779_v43 = vunpack.i.h.bf16 %v1960_v39  ;;  %v2777_v44 = vunpack.i.l.bf16 %v1960_v39 }
  0x82   :  { %v1974_v45 = vsel %vm58_vm0, %v2781_v36, %v2773_v38  ;;  %v1979_v46 = vsel %vm58_vm0, %v2774_v37, %v1430_v34  ;;  %v2788_v38 = vunpack.i.h.bf16 %v1931_v28 }
  0x83   :  { %2828 = vst [vmem:[#allocation11_spill] sm:$0xff] %v1974_v45  ;;  %v1986_v47 = vsel %vm58_vm0, %v2796_v42, %v2777_v44  ;;  %v1993_v48 = vsel %vm58_vm0, %v2779_v43, %v2780_v41  ;;  %v2837_v45 = vunpack.i.h.bf16 %v1935_v30 }
  0x84   :  { %2829 = vst [vmem:[#allocation12_spill] sm:$0xff] %v1979_v46  ;;  %1658 = vrot.lane.b32.xlu2 %v1963_v40, %s1765_s14 }
  0x85   :  { %1653 = vrot.lane.b32.xlu1 %v1939_v31, %s1764_s13 }
  0x86   :  { %1648 = vrot.lane.b32.xlu0 %v1907_v22, %s1761_s10  ;;  %v2002_v50 = vpop.permute.xlu2 %1493 }
  0x87   :  { %v2004_v51 = vpop.permute.xlu1 %1443 }
  0x88   :  { %v2786_v53 = vunpack.i.h.bf16 %v2004_v51  ;;  %v2785_v54 = vunpack.i.l.bf16 %v2004_v51  ;;  %v2013_v55 = vpop.permute.xlu0 %1438 }
  0x89   :  { %v2784_v57 = vunpack.i.h.bf16 %v2013_v55  ;;  %v2783_v58 = vunpack.i.l.bf16 %v2013_v55 }
  0x8a   :  { %v2025_v60 = vsel %vm101_vm1, %v2786_v53, %v2775_v49 }
  0x8b   :  { %v2032_v61 = vsel %vm101_vm1, %v2797_v56, %v2783_v58  ;;  %v2039_v62 = vsel %vm101_vm1, %v2784_v57, %v2785_v54 }
  0x8c   :  { %1673 = vrot.lane.b32.xlu2 %v1939_v31, %s1763_s12 }
  0x8d   :  { %1668 = vrot.lane.b32.xlu1 %v1907_v22, %s1760_s9 }
  0x8e   :  { %1663 = vrot.lane.b32.xlu0 %v1662_v59, %s1765_s14  ;;  %v2047_v0 = vpop.permute.xlu2 %1508 }
  0x8f   :  { %v2049_v1 = vpop.permute.xlu1 %1458  ;;  %v1510_v33 = vunpack.i.l.bf16 %v2047_v0 }
  0x90   :  { %v2798_v2 = vunpack.i.h.bf16 %v2049_v1  ;;  %v2052_v6 = vpop.permute.xlu0 %1453 }
  0x91   :  { %2830 = vst [vmem:[#allocation13_spill] sm:$0xff] %v2052_v6  ;;  %v1455_v13 = vunpack.i.l.bf16 %v2052_v6  ;;  %v2816_v6 = vunpack.i.h.bf16 %v2047_v0 }
  0x92   :  { %v2061_v14 = vsel %vm162_vm2, %v2798_v2, %v2787_v63  ;;  %v2795_v63 = vunpack.i.h.bf16 %v2002_v50  ;;  %v1747_v2 = vpack.i.bf16 %v2009_v52, %v1948_v32 }
  0x93   :  { %v2066_v16 = vsel %vm101_vm1, %v2776_v8, %v1455_v13  ;;  %v249_v4 = vsel %vm248_vm7, %v1510_v33, %v2816_v6  ;;  %v2836_v33 = vunpack.i.h.bf16 %v1899_v20 }
  0x94   :  { %2831 = vst [vmem:[#allocation14_spill] sm:$0xff] %v2066_v16  ;;  %1688 = vrot.lane.b32.xlu2 %v1907_v22, %s1759_s6 }
  0x95   :  { %1683 = vrot.lane.b32.xlu1 %v1662_v59, %s1764_s13 }
  0x96   :  { %1678 = vrot.lane.b32.xlu0 %v1963_v40, %s1764_s13  ;;  %v2074_v23 = vpop.permute.xlu2 %1523 }
  0x97   :  { %v2076_v26 = vpop.permute.xlu1 %1473 }
  0x98   :  { %v2778_v27 = vunpack.i.h.bf16 %v2076_v26  ;;  %v2782_v34 = vunpack.i.l.bf16 %v2076_v26  ;;  %v2080_v13 = vpop.permute.xlu0 %1468 }
  0x99   :  { %v2790_v22 = vunpack.i.h.bf16 %v2080_v13  ;;  %v2789_v37 = vunpack.i.l.bf16 %v2080_v13 }
  0x9a   :  { %v2088_v49 = vsel %vm162_vm2, %v2778_v27, %v1480_v19  ;;  %v2792_v19 = vunpack.i.l.bf16 %v2002_v50 }
  0x9b   :  { %v2095_v8 = vsel %vm162_vm2, %v2788_v38, %v2789_v37  ;;  %v2102_v44 = vsel %vm162_vm2, %v2790_v22, %v2782_v34 }
  0x9c   :  { %1703 = vrot.lane.b32.xlu2 %v1662_v59, %s1763_s12 }
  0x9d   :  { %1698 = vrot.lane.b32.xlu1 %v1963_v40, %s1763_s12 }
  0x9e   :  { %1693 = vrot.lane.b32.xlu0 %v1939_v31, %s1762_s11  ;;  %v2110_v27 = vpop.permute.xlu2 %1538 }
  0x9f   :  { %v2112_v43 = vpop.permute.xlu1 %1488 }
  0xa0   :  { %v2791_v41 = vunpack.i.h.bf16 %v2112_v43  ;;  %v2115_v36 = vpop.permute.xlu0 %1483 }
  0xa1   :  { %v1485_v10 = vunpack.i.l.bf16 %v2115_v36 }
  0xa2   :  { %v2122_v34 = vsel %vm205_vm3, %v2791_v41, %v2792_v19 }
  0xa4   :  { %1718 = vrot.lane.b32.xlu2 %v1662_v59, %s1762_s11 }
  0xa5   :  { %1713 = vrot.lane.b32.xlu1 %v1963_v40, %s1762_s11 }
  0xa6   :  { %1708 = vrot.lane.b32.xlu0 %v1939_v31, %s1761_s10  ;;  %v2129_v58 = vpop.permute.xlu2 %1553 }
  0xa7   :  { %v2131_v57 = vpop.permute.xlu1 %1503 }
  0xa8   :  { %2832 = vst [vmem:[#allocation15_spill] sm:$0xff] %v2131_v57  ;;  %v1505_v54 = vunpack.i.l.bf16 %v2131_v57  ;;  %v2134_v53 = vpop.permute.xlu0 %1498 }
  0xa9   :  { %v2794_v38 = vunpack.i.h.bf16 %v2134_v53  ;;  %v2793_v59 = vunpack.i.l.bf16 %v2134_v53 }
  0xab   :  { %v2144_v37 = vsel %vm205_vm3, %v2795_v63, %v2793_v59  ;;  %v2149_v22 = vsel %vm205_vm3, %v2794_v38, %v1505_v54 }
  0xac   :  { %607 = vrot.lane.b32.xlu2 %v2009_v52, %s1761_s10 }
  0xad   :  { %1728 = vrot.lane.b32.xlu1 %v1963_v40, %s1761_s10 }
  0xae   :  { %1723 = vrot.lane.b32.xlu0 %v1939_v31, %s1760_s9  ;;  %v2157_v41 = vpop.permute.xlu2 %1568 }
  0xaf   :  { %v2159_v19 = vpop.permute.xlu1 %1518 }
  0xb0   :  { %v2161_v59 = vpop.permute.xlu0 %1513 }
  0xb4   :  { %565 = vrot.lane.b32.xlu2 %v2009_v52, %s1760_s9 }
  0xb5   :  { %1738 = vrot.lane.b32.xlu1 %v1963_v40, %s1760_s9 }
  0xb6   :  { %1733 = vrot.lane.b32.xlu0 %v1939_v31, %s1759_s6  ;;  %v2169_v54 = vpop.permute.xlu2 %1583 }
  0xb7   :  { %v2171_v38 = vpop.permute.xlu1 %1533  ;;  %v2802_v63 = vunpack.i.h.bf16 %v2169_v54  ;;  %v1585_v42 = vunpack.i.l.bf16 %v2169_v54 }
  0xb8   :  { %v2175_v56 = vpop.permute.xlu0 %1528 }
  0xb9   :  { %v396_v21 = vsel %vm395_vm4, %v1585_v42, %v2802_v63  ;;  %v1535_v42 = vunpack.i.l.bf16 %v2171_v38 }
  0xba   :  { %981 = vmatpush.msra.mxu0 %v396_v21 }
  0xbc   :  { %1748 = vrot.lane.b32.xlu2 %v1747_v2, %s1758_s24 }
  0xbd   :  { %505 = vrot.lane.b32.xlu1 %v2009_v52, %s1759_s6 }
  0xbe   :  { %1743 = vrot.lane.b32.xlu0 %v1963_v40, %s1759_s6  ;;  %v2189_v18 = vpop.permute.xlu2 %1598  ;;  %v2813_v40 = vunpack.i.h.bf16 %v2171_v38 }
  0xbf   :  { %v2187_v31 = vpop.permute.xlu1 %1548 }
  0xc0   :  { %v2191_v15 = vpop.permute.xlu0 %1543  ;;  %v310_v9 = vsel %vm309_vm6, %v1535_v42, %v2813_v40  ;;  %v2834_v42 = vunpack.i.h.bf16 %v2049_v1 }
  0xc4   :  { %499 = vrot.lane.b32.xlu2 %v1920_v25, %s1759_s6 }
  0xc5   :  { %559 = vrot.lane.b32.xlu1 %v1920_v25, %s1760_s9 }
  0xc6   :  { %601 = vrot.lane.b32.xlu0 %v1920_v25, %s1761_s10  ;;  %v2203_v63 = vpop.permute.xlu2 %1613  ;;  %v2817_v25 = vunpack.i.h.bf16 %v2115_v36 }
  0xc7   :  { %v2199_v21 = vpop.permute.xlu1 %1563  ;;  %2833 = vst [vmem:[#allocation16_spill] sm:$0xff] %v2203_v63 }
  0xc8   :  { %v1559_v32 = vpop.permute.xlu0 %1558  ;;  %v206_v46 = vsel %vm205_vm3, %v1485_v10, %v2817_v25 }
  0xc9   :  { %v1561_v52 = vunpack.i.h.bf16 %v1559_v32  ;;  %v1560_v2 = vunpack.i.l.bf16 %v1559_v32  ;;  %v1460_v32 = vunpack.i.l.bf16 %v2049_v1  ;;  %v2838_v1 = vunpack.i.h.bf16 %v2169_v54 }
  0xcb   :  { %v353_v57 = vsel %vm352_vm5, %v1560_v2, %v1561_v52  ;;  %v163_v40 = vsel %vm162_vm2, %v1460_v32, %v2834_v42 }
  0xcc   :  { %982 = vmatpush.msra.mxu0 %v353_v57  ;;  %v1435_v57 = vunpack.i.l.bf16 %v1899_v20  ;;  %v1566_v20 = vunpack.i.h.bf16 %v2199_v21 }
  0xce   :  { %983 = vmatpush.msra.mxu0 %v310_v9  ;;  %v1410_v9 = vunpack.i.l.bf16 %v1935_v30  ;;  %v2229_v35 = vpop.permute.xlu2 %1628  ;;  %v1570_v30 = vunpack.i.l.bf16 %v2157_v41 }
  0xcf   :  { %v2214_v63 = vpop.permute.xlu1 %1578  ;;  %2835 = vst [vmem:[#allocation17_spill] sm:$0xff] %v2229_v35 }
  0xd0   :  { %v2219_v2 = vpop.permute.xlu0 %1573  ;;  %984 = vmatpush.msra.mxu0 %v249_v4  ;;  %v102_v4 = vsel %vm101_vm1, %v1435_v57, %v2836_v33  ;;  %v59_v10 = vsel %vm58_vm0, %v1410_v9, %v2837_v45  ;;  %v1565_v57 = vunpack.i.l.bf16 %v2199_v21  ;;  %v1545_v9 = vunpack.i.l.bf16 %v2191_v15 }
  0xd1   :  { %v1521_v45 = vunpack.i.h.bf16 %v2159_v19 }
  0xd2   :  { %985 = vmatpush.msra.mxu0 %v206_v46  ;;  %v1541_v46 = vunpack.i.h.bf16 %v2110_v27  ;;  %v354_v54 = vsel %vm352_vm5, %v1561_v52, %v1565_v57  ;;  %v2841_v52 = vunpack.i.h.bf16 %v2171_v38  ;;  %v2842_v38 = vunpack.i.h.bf16 %v2047_v0 }
  0xd3   :  { %v2845_v0 = vunpack.i.h.bf16 %v2115_v36  ;;  %v2850_v36 = vunpack.i.l.bf16 %v1931_v28 }
  0xd4   :  { %986 = vmatpush.msra.mxu0 %v163_v40 }
  0xd6   :  { %987 = vmatpush.msra.mxu0 %v102_v4 }
  0xd7   :  { %v2234_v6 = vpop.permute.xlu1 %1593 }
  0xd8   :  { %v2819_v32 = vunpack.i.h.bf16 %v2234_v6  ;;  %v1595_v42 = vunpack.i.l.bf16 %v2234_v6  ;;  %v1589_v40 = vpop.permute.xlu0 %1588  ;;  %988 = vmatpush.msra.mxu0 %v59_v10  ;;  %v1540_v10 = vunpack.i.l.bf16 %v2110_v27  ;;  %v1515_v27 = vunpack.i.l.bf16 %v2161_v59 }
  0xd9   :  { %v1591_v33 = vunpack.i.h.bf16 %v1589_v40  ;;  %v1590_v4 = vunpack.i.l.bf16 %v1589_v40 }
  0xda   :  { %989 = vmatpush.msra.mxu0 %v1809_v5  ;;  %v400_v25 = vsel %vm395_vm4, %v1595_v42, %v2819_v32  ;;  %v2839_v5 = vunpack.i.h.bf16 %v2157_v41  ;;  %v1516_v32 = vunpack.i.h.bf16 %v2161_v59  ;;  %v1490_v59 = vunpack.i.l.bf16 %v2112_v43 }
  0xdb   :  { %v397_v21 = vsel %vm395_vm4, %v2838_v1, %v1590_v4  ;;  %v398_v40 = vsel %vm395_vm4, %v1590_v4, %v1591_v33  ;;  %v399_v35 = vsel %vm395_vm4, %v1591_v33, %v1595_v42  ;;  %v355_v1 = vsel %vm352_vm5, %v1565_v57, %v1566_v20  ;;  %v2267_v42 = vpop.permute.xlu2 %1643 }
  0xdc   :  { %1061 = vmatpush.msrb.mxu0 %v400_v25  ;;  %1001 = vmatpush.msra.mxu1 %v397_v21  ;;  %v357_v16 = vsel %vm352_vm5, %v1570_v30, %v2839_v5  ;;  %v1520_v25 = vunpack.i.l.bf16 %v2159_v19  ;;  %v356_v33 = vsel %vm352_vm5, %v1566_v20, %v1570_v30  ;;  %v2840_v4 = vunpack.i.h.bf16 %v2191_v15 }
  0xdd   :  { %1021 = vmatpush.msra.mxu2 %v398_v40  ;;  %1041 = vmatpush.msra.mxu3 %v399_v35  ;;  %v312_v57 = vsel %vm309_vm6, %v1540_v10, %v1541_v46  ;;  %v1431_v40 = vunpack.i.h.bf16 %v1886_v17  ;;  %v313_v5 = vsel %vm309_vm6, %v1541_v46, %v1545_v9  ;;  %v2844_v46 = vunpack.i.l.bf16 %v2002_v50 }
  0xde   :  { %1062 = vmatpush.msrb.mxu0 %v357_v16  ;;  %1002 = vmatpush.msra.mxu1 %v354_v54  ;;  %v314_v21 = vsel %vm309_vm6, %v1545_v9, %v2840_v4  ;;  %v311_v16 = vsel %vm309_vm6, %v2841_v52, %v1540_v10  ;;  %v253_v54 = vsel %vm248_vm7, %v1520_v25, %v1521_v45 }
  0xdf   :  { %1022 = vmatpush.msra.mxu2 %v355_v1  ;;  %1042 = vmatpush.msra.mxu3 %v356_v33  ;;  %v2274_v35 = vpop.permute.xlu1 %1608  ;;  %v250_v10 = vsel %vm248_vm7, %v2842_v38, %v1515_v27  ;;  %v251_v1 = vsel %vm248_vm7, %v1515_v27, %v1516_v32  ;;  %v252_v17 = vsel %vm248_vm7, %v1516_v32, %v1520_v25  ;;  %v2843_v33 = vunpack.i.h.bf16 %v2002_v50 }
  0xe0   :  { %1063 = vmatpush.msrb.mxu0 %v314_v21  ;;  %v1610_v20 = vunpack.i.l.bf16 %v2274_v35  ;;  %v2282_v30 = vpop.permute.xlu0 %1603  ;;  %1003 = vmatpush.msra.mxu1 %v311_v16  ;;  %v207_v27 = vsel %vm205_vm3, %v2845_v0, %v1490_v59  ;;  %v2846_v21 = vunpack.i.h.bf16 %v2112_v43  ;;  %v2847_v50 = vunpack.i.h.bf16 %v2080_v13 }
  0xe1   :  { %1023 = vmatpush.msra.mxu2 %v312_v57  ;;  %1043 = vmatpush.msra.mxu3 %v313_v5  ;;  %v210_v9 = vsel %vm205_vm3, %v2844_v46, %v2843_v33  ;;  %v2848_v25 = vunpack.i.l.bf16 %v2080_v13  ;;  %v2849_v16 = vunpack.i.h.bf16 %v1931_v28  ;;  %v2851_v43 = vunpack.i.h.bf16 %v2004_v51 }
  0xe2   :  { %1064 = vmatpush.msrb.mxu0 %v253_v54  ;;  %1004 = vmatpush.msra.mxu1 %v250_v10  ;;  %v2301_v4 = vsel %vm58_vm0, %v1431_v40, %v1610_v20  ;;  %v208_v32 = vsel %vm205_vm3, %v1490_v59, %v2846_v21  ;;  %v2852_v59 = vunpack.i.l.bf16 %v2004_v51  ;;  %v2854_v28 = vunpack.i.l.bf16 %v2013_v55 }
  0xe3   :  { %1024 = vmatpush.msra.mxu2 %v251_v1  ;;  %1044 = vmatpush.msra.mxu3 %v252_v17  ;;  %v167_v52 = vsel %vm162_vm2, %v2848_v25, %v2847_v50  ;;  %v165_v57 = vsel %vm162_vm2, %v2850_v36, %v2849_v16  ;;  %v2335_v54 = vpop.permute.xlu2 %1658  ;;  %v2855_v51 = vunpack.i.h.bf16 %v1933_v29  ;;  %v1605_v1 = vunpack.i.l.bf16 %v2282_v30 }
  0xe4   :  { %1065 = vmatpush.msrb.mxu0 %v210_v9  ;;  %1005 = vmatpush.msra.mxu1 %v207_v27  ;;  %v106_v13 = vsel %vm101_vm1, %v2852_v59, %v2851_v43  ;;  %v2857_v17 = vunpack.i.h.bf16 %v1960_v39  ;;  %v2858_v33 = vunpack.i.l.bf16 %v1960_v39  ;;  %v1645_v9 = vunpack.i.l.bf16 %v2267_v42 }
  0xe5   :  { %1025 = vmatpush.msra.mxu2 %v208_v32  ;;  %1045 = vmatpush.msra.mxu3 %v2122_v34  ;;  %v2853_v34 = vunpack.i.h.bf16 %v2013_v55  ;;  %v1601_v55 = vunpack.i.h.bf16 %v2189_v18  ;;  %v1550_v39 = vunpack.i.l.bf16 %v2187_v31  ;;  %v2859_v0 = vunpack.i.h.bf16 %v2234_v6 }
  0xe6   :  { %1066 = vmatpush.msrb.mxu0 %v167_v52  ;;  %1006 = vmatpush.msra.mxu1 %v2061_v14  ;;  %v1600_v14 = vunpack.i.l.bf16 %v2189_v18  ;;  %v61_v46 = vsel %vm58_vm0, %v2858_v33, %v2857_v17  ;;  %v1580_v18 = vunpack.i.l.bf16 %v2214_v63  ;;  %v1525_v6 = vunpack.i.l.bf16 %v2074_v23  ;;  %v2868_v17 = vld [vmem:[#allocation14_spill] sm:$0xff] }
  0xe7   :  { %1026 = vmatpush.msra.mxu2 %v165_v57  ;;  %1046 = vmatpush.msra.mxu3 %v2095_v8  ;;  %v2327_v40 = vpop.permute.xlu1 %1623  ;;  %v104_v5 = vsel %vm101_vm1, %v2854_v28, %v2853_v34  ;;  %v2856_v8 = vunpack.i.l.bf16 %v1933_v29  ;;  %v1576_v29 = vunpack.i.h.bf16 %v2219_v2  ;;  %v2860_v27 = vunpack.i.h.bf16 %v2157_v41 }
  0xe8   :  { %1067 = vmatpush.msrb.mxu0 %v106_v13  ;;  %v2337_v38 = vpop.permute.xlu0 %1618  ;;  %1007 = vmatpush.msra.mxu1 %v2032_v61  ;;  %v1575_v61 = vunpack.i.l.bf16 %v2219_v2  ;;  %v2370_v2 = vld [vmem:[%s2770_s1] sm:$0xff]  ;;  %v2861_v16 = vunpack.i.h.bf16 %v2191_v15  ;;  %v254_v59 = vsel %vm248_vm7, %v1521_v45, %v1525_v6  ;;  %v2862_v34 = vunpack.i.h.bf16 %v2134_v53 }
  0xe9   :  { %1027 = vmatpush.msra.mxu2 %v104_v5  ;;  %v63_v10 = vsel %vm58_vm0, %v2856_v8, %v2855_v51  ;;  %1047 = vmatpush.msra.mxu3 %v2039_v62  ;;  %v1646_v62 = vunpack.i.h.bf16 %v2267_v42  ;;  %v360_v25 = vsel %vm352_vm5, %v1576_v29, %v1580_v18  ;;  %v2863_v28 = vunpack.i.l.bf16 %v2134_v53 }
  0xea   :  { %1068 = vmatpush.msrb.mxu0 %v63_v10  ;;  %1008 = vmatpush.msra.mxu1 %v1986_v47  ;;  %v401_v47 = vsel %vm395_vm4, %v2859_v0, %v1600_v14  ;;  %v358_v21 = vsel %vm352_vm5, %v2860_v27, %v1575_v61  ;;  %v359_v50 = vsel %vm352_vm5, %v1575_v61, %v1576_v29  ;;  %v2864_v5 = vunpack.i.h.bf16 %v2076_v26  ;;  %v2873_v0 = vld [vmem:[#allocation17_spill] sm:$0xff] }
  0xeb   :  { %1028 = vmatpush.msra.mxu2 %v61_v46  ;;  %1048 = vmatpush.msra.mxu3 %v1993_v48  ;;  %v1551_v48 = vunpack.i.h.bf16 %v2187_v31  ;;  %v795_v32 = vsel %vm395_vm4, %v1645_v9, %v1646_v62  ;;  %v1526_v31 = vunpack.i.h.bf16 %v2074_v23  ;;  %v315_v23 = vsel %vm309_vm6, %v2861_v16, %v1550_v39  ;;  %v2399_v43 = vpop.permute.xlu2 %1673  ;;  %v2870_v9 = vld [vmem:[#allocation10_spill] sm:$0xff]  ;;  %v2877_v27 = vld [vmem:[#allocation5_spill] sm:$0xff] }
  0xec   :  { %1069 = vmatpush.msrb.mxu0 %v1799_v3  ;;  %1009 = vmatpush.msra.mxu1 %v1816_v7  ;;  %v1555_v3 = vunpack.i.l.bf16 %v2129_v58  ;;  %v402_v7 = vsel %vm395_vm4, %v1600_v14, %v1601_v55  ;;  %v212_v19 = vsel %vm205_vm3, %v2863_v28, %v2862_v34  ;;  %v1675_v45 = vunpack.i.l.bf16 %v2399_v43  ;;  %v2878_v34 = vld [vmem:[#allocation15_spill] sm:$0xff] }
  0xed   :  { %1029 = vmatpush.msra.mxu2 %v1836_v11  ;;  %1049 = vmatpush.msra.mxu3 %v1841_v12  ;;  %v403_v11 = vsel %vm395_vm4, %v1601_v55, %v1605_v1  ;;  %v1530_v12 = vunpack.i.l.bf16 %v2175_v56  ;;  %v316_v36 = vsel %vm309_vm6, %v1550_v39, %v1551_v48  ;;  %v255_v13 = vsel %vm248_vm7, %v1525_v6, %v1526_v31  ;;  %v2876_v6 = vld [vmem:[#allocation4_spill] sm:$0xff] }
  0xee   :  { %1081 = vmatpush.msrb.mxu1 %v401_v47  ;;  %1374 = vmatmul.msk.f32.vlgmr.msra.gmra.mxu0 %vm970_vm8, %v2370_v2  ;;  %v317_v57 = vsel %vm309_vm6, %v1551_v48, %v1555_v3  ;;  %v1676_v53 = vunpack.i.h.bf16 %v2399_v43  ;;  %v1625_v1 = vunpack.i.l.bf16 %v2327_v40  ;;  %v1606_v46 = vunpack.i.h.bf16 %v2282_v30  ;;  %v2874_v48 = vld [vmem:[#allocation12_spill] sm:$0xff] }
  0xef   :  { %1101 = vmatpush.msrb.mxu2 %v402_v7  ;;  %1121 = vmatpush.msrb.mxu3 %v403_v11  ;;  %v2388_v52 = vpop.permute.xlu1 %1638  ;;  %v256_v15 = vsel %vm248_vm7, %v1526_v31, %v1530_v12  ;;  %v1626_v61 = vunpack.i.h.bf16 %v2327_v40  ;;  %v2871_v18 = vunpack.i.h.bf16 %v2870_v9  ;;  %v1581_v39 = vunpack.i.h.bf16 %v2214_v63  ;;  %v2875_v7 = vld [vmem:[#allocation3_spill] sm:$0xff] }
  0xf0   :  { %1082 = vmatpush.msrb.mxu1 %v358_v21  ;;  %v2392_v41 = vpop.permute.xlu0 %1633  ;;  %1141 = vmatpush.msra.mxu0 %v795_v32  ;;  %v1630_v47 = vunpack.i.l.bf16 %v2873_v0  ;;  %v1631_v30 = vunpack.i.h.bf16 %v2873_v0  ;;  %v797_v63 = vsel %vm395_vm4, %v1606_v46, %v1625_v1  ;;  %v796_v32 = vsel %vm395_vm4, %v1646_v62, %v1606_v46 }
  0xf1   :  { %1102 = vmatpush.msrb.mxu2 %v359_v50  ;;  %1122 = vmatpush.msrb.mxu3 %v360_v25  ;;  %v1635_v11 = vunpack.i.l.bf16 %v2392_v41  ;;  %v1636_v21 = vunpack.i.h.bf16 %v2392_v41  ;;  %v798_v31 = vsel %vm395_vm4, %v1625_v1, %v1626_v61  ;;  %v1556_v50 = vunpack.i.h.bf16 %v2129_v58  ;;  %v2880_v1 = vld [vmem:[#allocation13_spill] sm:$0xff] }
  0xf2   :  { %1083 = vmatpush.msrb.mxu1 %v315_v23  ;;  %1376 = vmatmul.msk.f32.vlgmr.msra.gmra.mxu2 %vm970_vm8, %v2370_v2  ;;  %v1640_v25 = vunpack.i.l.bf16 %v2388_v52  ;;  %v755_v23 = vsel %vm352_vm5, %v1581_v39, %v1630_v47  ;;  %v1641_v42 = vunpack.i.h.bf16 %v2388_v52  ;;  %v1531_v58 = vunpack.i.h.bf16 %v2175_v56  ;;  %v1755_v52 = vld [vmem:[%s2769_s0 + $0x80] sm:$0xff] }
  0xf3   :  { %1103 = vmatpush.msrb.mxu2 %v316_v36  ;;  %1123 = vmatpush.msrb.mxu3 %v317_v57  ;;  %v2450_v3 = vpop.permute.xlu2 %1688  ;;  %v756_v36 = vsel %vm352_vm5, %v1630_v47, %v1631_v30  ;;  %v713_v43 = vsel %vm309_vm6, %v1556_v50, %v1635_v11  ;;  %v1506_v28 = vunpack.i.h.bf16 %v2878_v34  ;;  %v1611_v46 = vunpack.i.h.bf16 %v2274_v35 }
  0xf4   :  { %1084 = vmatpush.msrb.mxu1 %v254_v59  ;;  %1377 = vmatmul.msk.f32.vlgmr.msra.gmra.mxu3 %vm970_vm8, %v2370_v2 }
  0xf5   :  { %1104 = vmatpush.msrb.mxu2 %v255_v13  ;;  %1124 = vmatpush.msrb.mxu3 %v256_v15  ;;  %v712_v13 = vsel %vm309_vm6, %v1676_v53, %v1556_v50  ;;  %v714_v15 = vsel %vm309_vm6, %v1635_v11, %v1636_v21  ;;  %v1660_v11 = vunpack.i.l.bf16 %v2335_v54 }
  0xf6   :  { %1085 = vmatpush.msrb.mxu1 %v2144_v37  ;;  %v2865_v37 = vunpack.i.l.bf16 %v2076_v26  ;;  %1378 = vmatmul.msk.f32.vlgmr.msrb.gmra.mxu0 %vm970_vm8, %v2370_v2  ;;  %v2867_v26 = vunpack.i.l.bf16 %v1915_v24 }
  0xf7   :  { %1105 = vmatpush.msrb.mxu2 %v212_v19  ;;  %1125 = vmatpush.msrb.mxu3 %v2149_v22  ;;  %v1654_v51 = vpop.permute.xlu1 %1653 }
  0xf8   :  { %1086 = vmatpush.msrb.mxu1 %v2102_v44  ;;  %v169_v14 = vsel %vm162_vm2, %v2865_v37, %v2864_v5  ;;  %v1656_v8 = vunpack.i.h.bf16 %v1654_v51  ;;  %v1655_v10 = vunpack.i.l.bf16 %v1654_v51  ;;  %v2428_v22 = vpop.permute.xlu0 %1648  ;;  %v2866_v44 = vunpack.i.h.bf16 %v1915_v24  ;;  %v2879_v51 = vld [vmem:[#allocation9_spill] sm:$0xff] }
  0xf9   :  { %1106 = vmatpush.msrb.mxu2 %v169_v14  ;;  %1126 = vmatpush.msrb.mxu3 %v2088_v49  ;;  %v711_v49 = vsel %vm309_vm6, %v1675_v45, %v1676_v53  ;;  %v2872_v24 = vunpack.i.l.bf16 %v2870_v9  ;;  %v1650_v57 = vunpack.i.l.bf16 %v2428_v22  ;;  %v1651_v59 = vunpack.i.h.bf16 %v2428_v22 }
  0xfa   :  { %1087 = vmatpush.msrb.mxu1 %v2025_v60  ;;  %v108_v55 = vsel %vm101_vm1, %v2867_v26, %v2866_v44  ;;  %v753_v33 = vsel %vm352_vm5, %v1655_v10, %v1656_v8  ;;  %v2869_v60 = vld [vmem:[#allocation11_spill] sm:$0xff]  ;;  %v754_v62 = vsel %vm352_vm5, %v1656_v8, %v1581_v39  ;;  %v653_v45 = vsel %vm248_vm7, %v1531_v58, %v1640_v25 }
  0xfb   :  { %1107 = vmatpush.msrb.mxu2 %v108_v55  ;;  %1127 = vmatpush.msrb.mxu3 %v2868_v17  ;;  %v65_v29 = vsel %vm58_vm0, %v2872_v24, %v2871_v18  ;;  %v1691_v5 = vunpack.i.h.bf16 %v2450_v3  ;;  %v654_v14 = vsel %vm248_vm7, %v1640_v25, %v1641_v42  ;;  %v1481_v53 = vunpack.i.h.bf16 %v2879_v51  ;;  %v2502_v10 = vpop.permute.xlu2 %1703  ;;  %v964_v39 = vld [vmem:[%s2771_s2] sm:$0xff] }
  0xfc   :  { %1088 = vmatpush.msrb.mxu1 %v2869_v60  ;;  %1142 = vmatpush.msra.mxu0 %v753_v33  ;;  %v1690_v8 = vunpack.i.l.bf16 %v2450_v3  ;;  %v611_v44 = vsel %vm205_vm3, %v1506_v28, %v1650_v57  ;;  %v612_v26 = vsel %vm205_vm3, %v1650_v57, %v1651_v59  ;;  %v1456_v17 = vunpack.i.h.bf16 %v2880_v1  ;;  %v2881_v33 = vld [vmem:[#allocation16_spill] sm:$0xff]  ;;  %v1757_v3 = vld [vmem:[%s2769_s0 + $0x70] sm:$0xff] }
  0xfd   :  { %1108 = vmatpush.msrb.mxu2 %v65_v29  ;;  %1128 = vmatpush.msrb.mxu3 %v2874_v48  ;;  %v1616_v18 = vunpack.i.h.bf16 %v2881_v33  ;;  %v1766_v48 = vmov 0   ;;  %v1705_v50 = vunpack.i.l.bf16 %v2502_v10 }
  0xfe   :  { %1089 = vmatpush.msrb.mxu1 %v2875_v7  ;;  %1143 = vmatpush.msra.mxu0 %v711_v49  ;;  %v1615_v49 = vunpack.i.l.bf16 %v2881_v33  ;;  %v510_v29 = vsel %vm101_vm1, %v1690_v8, %v1691_v5  ;;  %v509_v47 = vsel %vm101_vm1, %v1456_v17, %v1690_v8  ;;  %v1661_v7 = vunpack.i.h.bf16 %v2335_v54 }
  0xff   :  { %1109 = vmatpush.msrb.mxu2 %v2876_v6  ;;  %1129 = vmatpush.msrb.mxu3 %v2877_v27  ;;  %v2468_v12 = vpop.permute.xlu1 %1668  ;;  %v1621_v54 = vunpack.i.h.bf16 %v2337_v38 }
 0x100   :  { %1375 = vmatmul.msk.f32.vlgmr.msra.gmra.mxu1 %vm970_vm8, %v2370_v2  ;;  %v2472_v16 = vpop.permute.xlu0 %1663  ;;  %1381 = vmatmul.msk.f32.vlgmr.msrb.gmra.mxu3 %vm970_vm8, %v2370_v2  ;;  %v1670_v19 = vunpack.i.l.bf16 %v2468_v12  ;;  %v1671_v37 = vunpack.i.h.bf16 %v2468_v12  ;;  %v467_v27 = vsel %vm58_vm0, %v1611_v46, %v1615_v49 }
 0x101   :  { %1181 = vmatpush.msra.mxu2 %v797_v63  ;;  %1161 = vmatpush.msra.mxu1 %v796_v32  ;;  %v1665_v6 = vunpack.i.l.bf16 %v2472_v16 }
 0x102   :  { %1201 = vmatpush.msra.mxu3 %v798_v31  ;;  %1380 = vmatmul.msk.f32.vlgmr.msrb.gmra.mxu2 %vm970_vm8, %v2370_v2  ;;  %v569_v9 = vsel %vm162_vm2, %v1481_v53, %v1670_v19  ;;  %v570_v24 = vsel %vm162_vm2, %v1670_v19, %v1671_v37  ;;  %v468_v31 = vsel %vm58_vm0, %v1615_v49, %v1616_v18 }
 0x103   :  { %1182 = vmatpush.msra.mxu2 %v755_v23  ;;  %1162 = vmatpush.msra.mxu1 %v754_v62  ;;  %v2882_v23 = vld [vmem:[#allocation6_spill] sm:$0xff]  ;;  %v801_v62 = vsel %vm395_vm4, %v1660_v11, %v1661_v7  ;;  %v2556_v57 = vpop.permute.xlu2 %1718 }
 0x104   :  { %1202 = vmatpush.msra.mxu3 %v756_v36  ;;  %1752 = vset.pattern.permute.xlu0 %v1766_v48 }
 0x105   :  { %1183 = vmatpush.msra.mxu2 %v713_v43  ;;  %1163 = vmatpush.msra.mxu1 %v712_v13  ;;  %v2883_v43 = vld [vmem:[#allocation7_spill] sm:$0xff]  ;;  %v802_v13 = vsel %vm395_vm4, %v1661_v7, %v1665_v6 }
 0x106   :  { %1203 = vmatpush.msra.mxu3 %v714_v15  ;;  %967 = vperm.xlu0 %1752, %v964_v39   ;;  %v1720_v39 = vunpack.i.l.bf16 %v2556_v57 }
 0x107   :  { %1184 = vmatpush.msra.mxu2 %v653_v45  ;;  %v2512_v55 = vpop.permute.xlu1 %1683 }
 0x108   :  { %1204 = vmatpush.msra.mxu3 %v654_v14  ;;  %1379 = vmatmul.msk.f32.vlgmr.msrb.gmra.mxu1 %vm970_vm8, %v2370_v2  ;;  %v2519_v60 = vpop.permute.xlu0 %1678  ;;  %v1685_v25 = vunpack.i.l.bf16 %v2512_v55 }
 0x109   :  { %1185 = vmatpush.msra.mxu2 %v611_v44  ;;  %v1681_v63 = vunpack.i.h.bf16 %v2519_v60  ;;  %v1680_v32 = vunpack.i.l.bf16 %v2519_v60 }
 0x10a   :  { %1205 = vmatpush.msra.mxu3 %v612_v26 }
 0x10b   :  { %1186 = vmatpush.msra.mxu2 %v569_v9  ;;  %v759_v44 = vsel %vm352_vm5, %v1680_v32, %v1681_v63  ;;  %v760_v26 = vsel %vm352_vm5, %v1681_v63, %v1685_v25 }
 0x10c   :  { %1206 = vmatpush.msra.mxu3 %v570_v24 }
 0x10d   :  { %1187 = vmatpush.msra.mxu2 %v509_v47 }
 0x10e   :  { %1207 = vmatpush.msra.mxu3 %v510_v29 }
 0x10f   :  { %1188 = vmatpush.msra.mxu2 %v467_v27  ;;  %v2554_v36 = vpop.permute.xlu1 %1698 }
 0x110   :  { %1208 = vmatpush.msra.mxu3 %v468_v31  ;;  %v1701_v15 = vunpack.i.h.bf16 %v2554_v36  ;;  %v1700_v19 = vunpack.i.l.bf16 %v2554_v36  ;;  %v1694_v45 = vpop.permute.xlu0 %1693  ;;  %v608_v31 = vpop.permute.xlu2 %607  ;;  %v1754_v36 = vld [vmem:[%s2769_s0 + $0x78] sm:$0xff] }
 0x111   :  { %1189 = vmatpush.msra.mxu2 %v2882_v23  ;;  %v1696_v14 = vunpack.i.h.bf16 %v1694_v45  ;;  %v1695_v8 = vunpack.i.l.bf16 %v1694_v45 }
 0x112   :  { %1209 = vmatpush.msra.mxu3 %v2883_v43  ;;  %1384 = vmatmul.msk.f32.vlgmr.msra.gmra.mxu2 %vm970_vm8, %v2370_v2  ;;  %v717_v49 = vsel %vm309_vm6, %v1700_v19, %v1701_v15  ;;  %v718_v9 = vsel %vm309_vm6, %v1701_v15, %v1705_v50 }
 0x113   :  { %1261 = vmatpush.msrb.mxu2 %v801_v62  ;;  %1385 = vmatmul.msk.f32.vlgmr.msra.gmra.mxu3 %vm970_vm8, %v2370_v2  ;;  %v651_v24 = vsel %vm248_vm7, %v1695_v8, %v1696_v14  ;;  %v652_v29 = vsel %vm248_vm7, %v1696_v14, %v1531_v58 }
 0x114   :  { %1281 = vmatpush.msrb.mxu3 %v802_v13  ;;  %1144 = vmatpush.msra.mxu0 %v651_v24 }
 0x115   :  { %1262 = vmatpush.msrb.mxu2 %v759_v44  ;;  %1164 = vmatpush.msra.mxu1 %v652_v29 }
 0x116   :  { %1282 = vmatpush.msrb.mxu3 %v760_v26 }
 0x117   :  { %1263 = vmatpush.msrb.mxu2 %v717_v49  ;;  %v2579_v47 = vpop.permute.xlu1 %1713 }
 0x118   :  { %1283 = vmatpush.msrb.mxu3 %v718_v9  ;;  %v1716_v48 = vunpack.i.h.bf16 %v2579_v47  ;;  %v1715_v7 = vunpack.i.l.bf16 %v2579_v47  ;;  %v1709_v6 = vpop.permute.xlu0 %1708  ;;  %v566_v44 = vpop.permute.xlu2 %565 }
 0x119   :  { %v1711_v27 = vunpack.i.h.bf16 %v1709_v6  ;;  %v1710_v63 = vunpack.i.l.bf16 %v1709_v6 }
 0x11a   :  { %v657_v56 = vsel %vm248_vm7, %v1715_v7, %v1716_v48  ;;  %v658_v58 = vsel %vm248_vm7, %v1716_v48, %v1720_v39 }
 0x11b   :  { %v609_v50 = vsel %vm205_vm3, %v1710_v63, %v1711_v27  ;;  %v610_v25 = vsel %vm205_vm3, %v1711_v27, %v1506_v28  ;;  %1264 = vmatpush.msrb.mxu2 %v657_v56  ;;  %1284 = vmatpush.msrb.mxu3 %v658_v58  ;;  %v1666_v27 = vunpack.i.h.bf16 %v2472_v16  ;;  %v466_v63 = vsel %vm58_vm0, %v1610_v20, %v1611_v46  ;;  %v1753_v16 = vld [vmem:[%s2769_s0 + $0x48] sm:$0xff] }
 0x11c   :  { %1145 = vmatpush.msra.mxu0 %v609_v50  ;;  %1165 = vmatpush.msra.mxu1 %v610_v25  ;;  %v1706_v58 = vunpack.i.h.bf16 %v2502_v10  ;;  %v2884_v25 = vld [vmem:[#allocation8_spill] sm:$0xff]  ;;  %v1721_v10 = vunpack.i.h.bf16 %v2556_v57 }
 0x11d   :  { %v799_v35 = vsel %vm395_vm4, %v1626_v61, %v1666_v27  ;;  %v800_v20 = vsel %vm395_vm4, %v1666_v27, %v1660_v11 }
 0x11e   :  { %v715_v60 = vsel %vm309_vm6, %v1636_v21, %v1706_v58  ;;  %v716_v11 = vsel %vm309_vm6, %v1706_v58, %v1700_v19  ;;  %v655_v57 = vsel %vm248_vm7, %v1641_v42, %v1721_v10 }
 0x11f   :  { %v2591_v23 = vpop.permute.xlu1 %1728 }
 0x120   :  { %v1731_v62 = vunpack.i.h.bf16 %v2591_v23  ;;  %v1730_v43 = vunpack.i.l.bf16 %v2591_v23  ;;  %v1724_v13 = vpop.permute.xlu0 %1723  ;;  %v1749_v56 = vpop.permute.xlu2 %1748 }
 0x121   :  { %v1726_v15 = vunpack.i.h.bf16 %v1724_v13  ;;  %v1725_v45 = vunpack.i.l.bf16 %v1724_v13  ;;  %v1751_v1 = vunpack.i.h.bf16 %v1749_v56  ;;  %v656_v13 = vsel %vm248_vm7, %v1721_v10, %v1715_v7 }
 0x122   :  { %v615_v14 = vsel %vm205_vm3, %v1730_v43, %v1731_v62  ;;  %v616_v34 = vsel %vm205_vm3, %v1731_v62, %v608_v31  ;;  %v1686_v31 = vunpack.i.h.bf16 %v2512_v55  ;;  %v1620_v7 = vunpack.i.l.bf16 %v2337_v38 }
 0x123   :  { %v567_v28 = vsel %vm162_vm2, %v1725_v45, %v1726_v15  ;;  %v568_v8 = vsel %vm162_vm2, %v1726_v15, %v1481_v53  ;;  %1265 = vmatpush.msrb.mxu2 %v615_v14  ;;  %1285 = vmatpush.msrb.mxu3 %v616_v34 }
 0x124   :  { %1146 = vmatpush.msra.mxu0 %v567_v28  ;;  %1166 = vmatpush.msra.mxu1 %v568_v8  ;;  %v757_v62 = vsel %vm352_vm5, %v1631_v30, %v1686_v31  ;;  %v758_v40 = vsel %vm352_vm5, %v1686_v31, %v1680_v32  ;;  %v469_v38 = vsel %vm58_vm0, %v1616_v18, %v1620_v7 }
 0x125   :  { %v470_v12 = vsel %vm58_vm0, %v1620_v7, %v1621_v54 }
 0x127   :  { %v2603_v26 = vpop.permute.xlu1 %1738 }
 0x128   :  { %v1741_v49 = vunpack.i.h.bf16 %v2603_v26  ;;  %v1740_v9 = vunpack.i.l.bf16 %v2603_v26  ;;  %v1734_v24 = vpop.permute.xlu0 %1733  ;;  %v500_v47 = vpop.permute.xlu2 %499 }
 0x129   :  { %v1736_v29 = vunpack.i.h.bf16 %v1734_v24  ;;  %v1735_v39 = vunpack.i.l.bf16 %v1734_v24  ;;  %v511_v23 = vsel %vm101_vm1, %v1691_v5, %v500_v47 }
 0x12a   :  { %v573_v51 = vsel %vm162_vm2, %v1740_v9, %v1741_v49  ;;  %v574_v53 = vsel %vm162_vm2, %v1741_v49, %v566_v44 }
 0x12b   :  { %v507_v48 = vsel %vm101_vm1, %v1735_v39, %v1736_v29  ;;  %v508_v6 = vsel %vm101_vm1, %v1736_v29, %v1456_v17  ;;  %1266 = vmatpush.msrb.mxu2 %v573_v51  ;;  %1286 = vmatpush.msrb.mxu3 %v574_v53 }
 0x12c   :  { %1147 = vmatpush.msra.mxu0 %v507_v48  ;;  %1167 = vmatpush.msra.mxu1 %v508_v6 }
 0x12e   :  { %1148 = vmatpush.msra.mxu0 %v2301_v4  ;;  %1168 = vmatpush.msra.mxu1 %v466_v63  ;;  %v1750_v4 = vunpack.i.l.bf16 %v1749_v56 }
 0x12f   :  { %v506_v17 = vpop.permute.xlu1 %505 }
 0x130   :  { %v1744_v50 = vpop.permute.xlu0 %1743  ;;  %1149 = vmatpush.msra.mxu0 %v1753_v16  ;;  %1169 = vmatpush.msra.mxu1 %v2884_v25  ;;  %v472_v30 = vsel %vm58_vm0, %v1750_v4, %v1751_v1  ;;  %v471_v32 = vsel %vm58_vm0, %v1621_v54, %v1750_v4 }
 0x131   :  { %v1746_v55 = vunpack.i.h.bf16 %v1744_v50  ;;  %v1745_v46 = vunpack.i.l.bf16 %v1744_v50  ;;  %1382 = vmatmul.msk.f32.vlgmr.msra.gmra.mxu0 %vm970_vm8, %v2370_v2  ;;  %1383 = vmatmul.msk.f32.vlgmr.msra.gmra.mxu1 %vm970_vm8, %v2370_v2 }
 0x132   :  { %1221 = vmatpush.msrb.mxu0 %v799_v35  ;;  %1241 = vmatpush.msrb.mxu1 %v800_v20 }
 0x133   :  { %v513_v61 = vsel %vm101_vm1, %v1745_v46, %v1746_v55  ;;  %v514_v0 = vsel %vm101_vm1, %v1746_v55, %v506_v17 }
 0x134   :  { %1222 = vmatpush.msrb.mxu0 %v757_v62  ;;  %1242 = vmatpush.msrb.mxu1 %v758_v40 }
 0x135   :  { %1267 = vmatpush.msrb.mxu2 %v513_v61  ;;  %1287 = vmatpush.msrb.mxu3 %v514_v0 }
 0x136   :  { %1223 = vmatpush.msrb.mxu0 %v715_v60  ;;  %1243 = vmatpush.msrb.mxu1 %v716_v11 }
 0x137   :  { %1268 = vmatpush.msrb.mxu2 %v471_v32  ;;  %1288 = vmatpush.msrb.mxu3 %v472_v30  ;;  %v560_v41 = vpop.permute.xlu1 %559 }
 0x138   :  { %1224 = vmatpush.msrb.mxu0 %v655_v57  ;;  %1244 = vmatpush.msrb.mxu1 %v656_v13  ;;  %v602_v21 = vpop.permute.xlu0 %601  ;;  %v571_v22 = vsel %vm162_vm2, %v1671_v37, %v560_v41  ;;  %v1756_v37 = vld [vmem:[%s2769_s0 + $0x68] sm:$0xff] }
 0x139   :  { %1269 = vmatpush.msrb.mxu2 %v1754_v36  ;;  %1289 = vmatpush.msrb.mxu3 %v1755_v52  ;;  %v613_v42 = vsel %vm205_vm3, %v1651_v59, %v602_v21  ;;  %v614_v19 = vsel %vm205_vm3, %v602_v21, %v1730_v43  ;;  %v572_v59 = vsel %vm162_vm2, %v560_v41, %v1740_v9 }
 0x13a   :  { %1388 = vmatmul.msk.f32.vlgmr.msrb.gmra.mxu2 %vm970_vm8, %v2370_v2  ;;  %1389 = vmatmul.msk.f32.vlgmr.msrb.gmra.mxu3 %vm970_vm8, %v2370_v2  ;;  %v512_v43 = vsel %vm101_vm1, %v500_v47, %v1745_v46 }
 0x13b   :  { %1225 = vmatpush.msrb.mxu0 %v613_v42  ;;  %1245 = vmatpush.msrb.mxu1 %v614_v19 }
 0x13d   :  { %1226 = vmatpush.msrb.mxu0 %v571_v22  ;;  %1246 = vmatpush.msrb.mxu1 %v572_v59 }
 0x13f   :  { %1227 = vmatpush.msrb.mxu0 %v511_v23  ;;  %1247 = vmatpush.msrb.mxu1 %v512_v43 }
 0x141   :  { %1228 = vmatpush.msrb.mxu0 %v469_v38  ;;  %1248 = vmatpush.msrb.mxu1 %v470_v12 }
 0x143   :  { %1229 = vmatpush.msrb.mxu0 %v1756_v37  ;;  %1249 = vmatpush.msrb.mxu1 %v1757_v3 }
 0x144   :  { %1386 = vmatmul.msk.f32.vlgmr.msrb.gmra.mxu0 %vm970_vm8, %v2370_v2  ;;  %1387 = vmatmul.msk.f32.vlgmr.msrb.gmra.mxu1 %vm970_vm8, %v2370_v2 }
 0x16b   :  { %v991_v5 = vpop.f32.mrf.mxu0 }
 0x173   :  { %v1071_v45 = vpop.f32.mrf.mxu0 }
 0x175   :  { %v1031_v33 = vpop.f32.mrf.mxu2 }
 0x177   :  { %v1051_v18 = vpop.f32.mrf.mxu3 }
 0x178   :  { %v2703_v14 = vpop.permute.xlu0 %967 }
 0x179   :  { %v992_v34 = vadd.f32 %v991_v5, %v2703_v14  ;;  %v1032_v8 = vadd.f32 %v1031_v33, %v2703_v14  ;;  %v1052_v44 = vadd.f32 %v1051_v18, %v2703_v14  ;;  %v1072_v26 = vadd.f32 %v1071_v45, %v2703_v14 }
 0x17b   :  { %v1294_v49 = vmul.f32 0.5, %v992_v34  ;;  %v1296_v2 = vmul.f32 0.5, %v1032_v8  ;;  %v1297_v24 = vmul.f32 0.5, %v1052_v44  ;;  %v1298_v29 = vmul.f32 0.5, %v1072_v26 }
 0x17d   :  { %v1011_v15 = vpop.f32.mrf.mxu1  ;;  %v1310_v39 = vmax.f32 %v992_v34, %v1294_v49  ;;  %v1312_v53 = vmax.f32 %v1032_v8, %v1296_v2  ;;  %v1313_v48 = vmax.f32 %v1052_v44, %v1297_v24  ;;  %v1314_v6 = vmax.f32 %v1072_v26, %v1298_v29 }
 0x17e   :  { %v1012_v28 = vadd.f32 %v1011_v15, %v2703_v14 }
 0x17f   :  { %1326 = vst [vmem:[%s2772_s3] sm:$0xff] %v1310_v39 }
 0x180   :  { %v1295_v9 = vmul.f32 0.5, %v1012_v28  ;;  %1328 = vst [vmem:[%s2772_s3 + $0x10] sm:$0xff] %v1312_v53 }
 0x181   :  { %1329 = vst [vmem:[%s2772_s3 + $0x18] sm:$0xff] %v1313_v48 }
 0x182   :  { %v1311_v51 = vmax.f32 %v1012_v28, %v1295_v9  ;;  %1330 = vst [vmem:[%s2772_s3 + $0x20] sm:$0xff] %v1314_v6 }
 0x183   :  { %v1131_v63 = vpop.f32.mrf.mxu3 }
 0x184   :  { %1327 = vst [vmem:[%s2772_s3 + $0x8] sm:$0xff] %v1311_v51  ;;  %v1132_v56 = vadd.f32 %v1131_v63, %v2703_v14 }
 0x185   :  { %v1091_v27 = vpop.f32.mrf.mxu1  ;;  %v1111_v50 = vpop.f32.mrf.mxu2 }
 0x186   :  { %v1092_v31 = vadd.f32 %v1091_v27, %v2703_v14  ;;  %v1301_v17 = vmul.f32 0.5, %v1132_v56  ;;  %v1112_v25 = vadd.f32 %v1111_v50, %v2703_v14 }
 0x188   :  { %v1299_v1 = vmul.f32 0.5, %v1092_v31  ;;  %v1317_v16 = vmax.f32 %v1132_v56, %v1301_v17  ;;  %v1300_v35 = vmul.f32 0.5, %v1112_v25 }
 0x18a   :  { %v1315_v58 = vmax.f32 %v1092_v31, %v1299_v1  ;;  %1333 = vst [vmem:[%s2772_s3 + $0x38] sm:$0xff] %v1317_v16  ;;  %v1316_v20 = vmax.f32 %v1112_v25, %v1300_v35 }
 0x18c   :  { %1331 = vst [vmem:[%s2772_s3 + $0x28] sm:$0xff] %v1315_v58 }
 0x18d   :  { %1332 = vst [vmem:[%s2772_s3 + $0x30] sm:$0xff] %v1316_v20 }
 0x195   :  { %v1191_v4 = vpop.f32.mrf.mxu2 }
 0x196   :  { %v1211_v55 = vpop.f32.mrf.mxu3  ;;  %v1192_v46 = vadd.f32 %v1191_v4, %v2703_v14 }
 0x197   :  { %v1212_v10 = vadd.f32 %v1211_v55, %v2703_v14 }
 0x198   :  { %v1304_v62 = vmul.f32 0.5, %v1192_v46 }
 0x199   :  { %v1305_v40 = vmul.f32 0.5, %v1212_v10 }
 0x19a   :  { %v1320_v54 = vmax.f32 %v1192_v46, %v1304_v62 }
 0x19b   :  { %v1321_v61 = vmax.f32 %v1212_v10, %v1305_v40 }
 0x19c   :  { %1392 = vst [vmem:[%s2772_s3 + $0x50] sm:$0xff] %v1320_v54 }
 0x19d   :  { %1393 = vst [vmem:[%s2772_s3 + $0x58] sm:$0xff] %v1321_v61 }
 0x1ae   :  { %v1151_v0 = vpop.f32.mrf.mxu0  ;;  %v1171_v30 = vpop.f32.mrf.mxu1 }
 0x1af   :  { %v1152_v60 = vadd.f32 %v1151_v0, %v2703_v14  ;;  %v1172_v11 = vadd.f32 %v1171_v30, %v2703_v14 }
 0x1b1   :  { %v1302_v32 = vmul.f32 0.5, %v1152_v60  ;;  %v1303_v57 = vmul.f32 0.5, %v1172_v11 }
 0x1b3   :  { %v1318_v13 = vmax.f32 %v1152_v60, %v1302_v32  ;;  %v1319_v41 = vmax.f32 %v1172_v11, %v1303_v57 }
 0x1b5   :  { %1390 = vst [vmem:[%s2772_s3 + $0x40] sm:$0xff] %v1318_v13 }
 0x1b6   :  { %1391 = vst [vmem:[%s2772_s3 + $0x48] sm:$0xff] %v1319_v41 }
 0x1bd   :  { %v1271_v21 = vpop.f32.mrf.mxu2  ;;  %v1291_v36 = vpop.f32.mrf.mxu3 }
 0x1be   :  { %v1272_v52 = vadd.f32 %v1271_v21, %v2703_v14  ;;  %v1292_v42 = vadd.f32 %v1291_v36, %v2703_v14 }
 0x1c0   :  { %v1308_v19 = vmul.f32 0.5, %v1272_v52  ;;  %v1309_v47 = vmul.f32 0.5, %v1292_v42 }
 0x1c1   :  { %v1231_v7 = vpop.f32.mrf.mxu0  ;;  %v1251_v22 = vpop.f32.mrf.mxu1 }
 0x1c2   :  { %v1324_v59 = vmax.f32 %v1272_v52, %v1308_v19  ;;  %v1325_v23 = vmax.f32 %v1292_v42, %v1309_v47  ;;  %v1232_v43 = vadd.f32 %v1231_v7, %v2703_v14  ;;  %v1252_v38 = vadd.f32 %v1251_v22, %v2703_v14 }
 0x1c4   :  { %1396 = vst [vmem:[%s2772_s3 + $0x70] sm:$0xff] %v1324_v59  ;;  %v1306_v12 = vmul.f32 0.5, %v1232_v43  ;;  %v1307_v37 = vmul.f32 0.5, %v1252_v38 }
 0x1c5   :  { %1397 = vst [vmem:[%s2772_s3 + $0x78] sm:$0xff] %v1325_v23 }
 0x1c6   :  { %v1322_v3 = vmax.f32 %v1232_v43, %v1306_v12  ;;  %v1323_v5 = vmax.f32 %v1252_v38, %v1307_v37 }
 0x1c8   :  { %1394 = vst [vmem:[%s2772_s3 + $0x60] sm:$0xff] %v1322_v3 }
 0x1c9   :  { %1395 = vst [vmem:[%s2772_s3 + $0x68] sm:$0xff] %v1323_v5 }

</bundles_post_ra>
